<compile_context>
chip_gen: v6e
topology: v6e:2x2x1
jax: 0.10.0
libtpu: 0.0.40
codegen_flags: <defaults>
</compile_context>

<pallas_src>
import functools

import jax
import jax.numpy as jnp
from jax.experimental import pallas as pl
from jax.experimental.pallas import tpu as pltpu


def _round_up(x, m):
    return ((x + m - 1) // m) * m


def _param_offsets(state_size, hidden):
    """Row offsets of each parameter band in the packed slab.

    Every band starts on an 8-row (sublane) boundary so in-kernel slices are
    zero-cost views of the (8,128)-tiled VMEM buffer.
    """
    S, H = state_size, hidden
    o_w1s = 0                       # (S, H)  state part of layer-1 weight
    o_w1a = _round_up(S, 8)         # (1, H)  action row of layer-1 weight
    o_b1 = o_w1a + 8                # (1, H)
    o_w2 = o_b1 + 8                 # (H, H)
    o_b2 = o_w2 + _round_up(H, 8)   # (1, H)
    o_w3 = o_b2 + 8                 # (1, H)  layer-3 weight stored as a row
    o_b3 = o_w3 + 8                 # scalar at [o_b3, 0]
    rows = _round_up(o_b3 + 1, 8)
    return dict(w1s=o_w1s, w1a=o_w1a, b1=o_b1, w2=o_w2, b2=o_b2,
                w3=o_w3, b3=o_b3, rows=rows)


def _value_kernel(s_ref, a_ref, w_ref, o_ref, *, state_size, hidden, offsets):
    """s_ref: (TB, S), a_ref: (TB, 1), w_ref: packed (R, H),
    o_ref: (1, TB) or (1, 1, TB) — lane-dense output row."""
    S, H = state_size, hidden
    off = offsets

    s = s_ref[...]                                   # (TB, S)
    a = a_ref[...]                                   # (TB, 1)

    w1s = w_ref[off["w1s"]:off["w1s"] + S, :]        # (S, H)
    w1a = w_ref[off["w1a"]:off["w1a"] + 1, :]        # (1, H)
    b1 = w_ref[off["b1"]:off["b1"] + 1, :]           # (1, H)
    w2 = w_ref[off["w2"]:off["w2"] + H, :]           # (H, H)
    b2 = w_ref[off["b2"]:off["b2"] + 1, :]           # (1, H)
    w3 = w_ref[off["w3"]:off["w3"] + 1, :]           # (1, H)
    b3 = w_ref[off["b3"]:off["b3"] + 1, 0:1]         # (1, 1)

    # Layer 1: MXU matmul on the state block (bf16 inputs use the bf16-native
    # MXU path; accumulation is always f32). The action column and bias are a
    # free VPU multiply-add (replaces the wrapper-side hstack/concat).
    if s.dtype == jnp.bfloat16:
        h1 = jnp.dot(s, w1s.astype(jnp.bfloat16),
                     preferred_element_type=jnp.float32)
    else:
        h1 = jnp.dot(s, w1s, preferred_element_type=jnp.float32)
    h1 = h1 + a.astype(jnp.float32) * w1a + b1
    h1 = jnp.maximum(h1, 0.0)

    # Layer 2: MXU matmul, f32.
    h2 = jnp.dot(h1, w2, preferred_element_type=jnp.float32) + b2
    h2 = jnp.maximum(h2, 0.0)

    # Layer 3 (H -> 1), produced LANE-DENSE: contract both operands on H
    # (flash-attention-style "nt" dot_general), giving a (1, TB) row so the
    # store is an unmasked, contiguous write instead of a (TB, 1) column.
    out = jax.lax.dot_general(
        w3, h2,
        dimension_numbers=(((1,), (1,)), ((), ())),
        preferred_element_type=jnp.float32) + b3      # (1, TB)
    o_ref[...] = out.reshape(o_ref.shape).astype(o_ref.dtype)


def pack_params(params, state_size, hidden):
    """Pack (w1,b1,w2,b2,w3,b3) into one f32 slab of shape (R, hidden)."""
    w1, b1, w2, b2, w3, b3 = params     # w*: (in, out), b*: (1, out)
    S, H = state_size, hidden
    off = _param_offsets(S, H)
    packed = jnp.zeros((off["rows"], H), jnp.float32)
    packed = packed.at[off["w1s"]:off["w1s"] + S, :].set(
        w1[:S, :].astype(jnp.float32))
    packed = packed.at[off["w1a"]:off["w1a"] + 1, :].set(
        w1[S:S + 1, :].astype(jnp.float32))
    packed = packed.at[off["b1"]:off["b1"] + 1, :].set(
        b1.astype(jnp.float32).reshape(1, H))
    packed = packed.at[off["w2"]:off["w2"] + H, :].set(
        w2.astype(jnp.float32))
    packed = packed.at[off["b2"]:off["b2"] + 1, :].set(
        b2.astype(jnp.float32).reshape(1, H))
    packed = packed.at[off["w3"]:off["w3"] + 1, :].set(
        w3.astype(jnp.float32).reshape(H, 1).T)        # store as (1, H) row
    packed = packed.at[off["b3"], 0].set(
        b3.astype(jnp.float32).reshape(()))
    return packed


# Scoped VMEM limit: above v5e/v6e defaults (16/32 MiB), safely below v7x's
# 64 MiB physical VMEM.
_VMEM_LIMIT_BYTES = 48 * 1024 * 1024
_LATENCY_MAX_B = 4096   # single-program path only for genuinely small batches


def ddpg_value_forward(state, action, packed_w, *, state_size, hidden,
                       block_b=8192, input_dtype=jnp.float32):
    """state: (B, state_size), action: (B, 1). Returns (B, 1) float32.

    input_dtype=jnp.bfloat16 halves HBM traffic / input VMEM tiles (MXU stays
    f32-accumulating); default f32 matches PyTorch `.float()` exactly.
    """
    B = state.shape[0]
    state = state.astype(input_dtype)
    action = action.astype(input_dtype)
    offs = _param_offsets(state_size, hidden)
    kernel = functools.partial(_value_kernel, state_size=state_size,
                               hidden=hidden, offsets=offs)

    if B <= _LATENCY_MAX_B:
        # Latency path: one program, 3 operand DMAs, everything in VMEM,
        # lane-dense (1, B) output.
        vmem = pl.BlockSpec(memory_space=pltpu.MemorySpace.VMEM)
        out = pl.pallas_call(
            kernel,
            out_shape=jax.ShapeDtypeStruct((1, B), jnp.float32),
            in_specs=[vmem, vmem, vmem],
            out_specs=vmem,
            compiler_params=pltpu.CompilerParams(
                vmem_limit_bytes=_VMEM_LIMIT_BYTES),
        )(state, action, packed_w)
        return out.reshape(B, 1)

    # Throughput path: cdiv grid over batch tiles with a zero-padded tail,
    # weights VMEM-resident across the grid, lane-dense (1, block) output rows.
    # Clamp the tile so the grid has >= ~8 steps (pipelining / both v7x TCs).
    bb = min(block_b, _round_up(pl.cdiv(B, 8), 128))
    bb = max(bb, 128)
    nb = pl.cdiv(B, bb)
    b_pad = nb * bb
    if b_pad != B:
        pad = b_pad - B
        state = jnp.pad(state, ((0, pad), (0, 0)))
        action = jnp.pad(action, ((0, pad), (0, 0)))

    R = packed_w.shape[0]
    out = pl.pallas_call(
        kernel,
        out_shape=jax.ShapeDtypeStruct((nb, 1, bb), jnp.float32),
        grid=(nb,),
        in_specs=[
            pl.BlockSpec((bb, state_size), lambda i: (i, 0)),
            pl.BlockSpec((bb, 1), lambda i: (i, 0)),
            pl.BlockSpec((R, hidden), lambda i: (0, 0)),   # resident weights
        ],
        out_specs=pl.BlockSpec((1, 1, bb), lambda i: (i, 0, 0)),
        compiler_params=pltpu.CompilerParams(
            dimension_semantics=("parallel",),
            vmem_limit_bytes=_VMEM_LIMIT_BYTES),
    )(state, action, packed_w)
    # (nb, 1, bb) row-major flatten == batch order; reshape is free.
    return out.reshape(b_pad, 1)[:B]


def init_params(key, state_size, hidden_dim):
    """PyTorch nn.Linear default init: U(-1/sqrt(fan_in), 1/sqrt(fan_in)).
    Weights stored as (in, out)."""
    in_dims = [state_size + 1, hidden_dim, hidden_dim]
    out_dims = [hidden_dim, hidden_dim, 1]
    params = []
    for din, dout in zip(in_dims, out_dims):
        key, kw, kb = jax.random.split(key, 3)
        bound = 1.0 / jnp.sqrt(jnp.float32(din))
        w = jax.random.uniform(kw, (din, dout), jnp.float32, -bound, bound)
        b = jax.random.uniform(kb, (1, dout), jnp.float32, -bound, bound)
        params += [w, b]
    return tuple(params)


def _reference(state, action, params):
    w1, b1, w2, b2, w3, b3 = params
    x = jnp.concatenate([state, action], axis=1).astype(jnp.float32)
    h1 = jnp.maximum(x @ w1 + b1, 0.0)
    h2 = jnp.maximum(h1 @ w2 + b2, 0.0)
    return h2 @ w3 + b3


if __name__ == "__main__":
    STATE = 16      # state_size
    HIDDEN = 32     # CFG_DICT['ACTOR_CRITIC']['VALUE_HIDDEN_DIM']

    key = jax.random.PRNGKey(0)
    k_s, k_a, k_p, k_bs, k_ba = jax.random.split(key, 5)
    params = init_params(k_p, STATE, HIDDEN)
    packed = pack_params(params, STATE, HIDDEN)

    # Small batch -> latency path (single program).
    B = 8
    state = jax.random.normal(k_s, (B, STATE), jnp.float32)
    action = jax.random.normal(k_a, (B, 1), jnp.float32)
    out = jax.block_until_ready(ddpg_value_forward(
        state, action, packed, state_size=STATE, hidden=HIDDEN))
    ref = _reference(state, action, params)
    assert out.shape == (B, 1)
    assert jnp.allclose(out, ref, atol=1e-4, rtol=1e-4), "mismatch (latency path)"

    # Larger, non-tile-multiple batch -> pipelined cdiv grid with padded tail.
    BB = 12_345
    state_b = jax.random.normal(k_bs, (BB, STATE), jnp.float32)
    action_b = jax.random.normal(k_ba, (BB, 1), jnp.float32)
    out_b = jax.block_until_ready(ddpg_value_forward(
        state_b, action_b, packed, state_size=STATE, hidden=HIDDEN))
    ref_b = _reference(state_b, action_b, params)
    assert out_b.shape == (BB, 1)
    assert jnp.allclose(out_b, ref_b, atol=1e-4, rtol=1e-4), "mismatch (grid path)"

    # bf16-input throughput path (halved HBM traffic), looser tolerance.
    out_h = jax.block_until_ready(ddpg_value_forward(
        state_b, action_b, packed, state_size=STATE, hidden=HIDDEN,
        input_dtype=jnp.bfloat16))
    ref_h = _reference(state_b.astype(jnp.bfloat16).astype(jnp.float32),
                       action_b.astype(jnp.bfloat16).astype(jnp.float32), params)
    assert out_h.shape == (BB, 1)
    assert jnp.allclose(out_h, ref_h, atol=3e-2, rtol=3e-2), "mismatch (bf16 path)"

    print("KERNEL_OK")
</pallas_src>

<mosaic_0001>
module attributes {stable_mosaic.version = 11 : i64} {
  func.func @_value_kernel(%arg0: memref<8x16xf32, #tpu.memory_space<vmem>>, %arg1: memref<8x1xf32, #tpu.memory_space<vmem>>, %arg2: memref<88x32xf32, #tpu.memory_space<vmem>>, %arg3: memref<1x8xf32, #tpu.memory_space<vmem>>) attributes {dimension_semantics = [], scalar_prefetch = 0 : i64, scratch_operands = 0 : i64, tpu.core_type = #tpu.core_type<tc>} {
    %c0 = arith.constant 0 : index
    %c0_0 = arith.constant 0 : index
    %0 = vector.load %arg0[%c0, %c0_0] : memref<8x16xf32, #tpu.memory_space<vmem>>, vector<8x16xf32>
    %c0_1 = arith.constant 0 : index
    %c0_2 = arith.constant 0 : index
    %1 = vector.load %arg1[%c0_1, %c0_2] : memref<8x1xf32, #tpu.memory_space<vmem>>, vector<8x1xf32>
    %c0_3 = arith.constant 0 : index
    %c0_4 = arith.constant 0 : index
    %2 = vector.load %arg2[%c0_3, %c0_4] : memref<88x32xf32, #tpu.memory_space<vmem>>, vector<16x32xf32>
    %c16 = arith.constant 16 : index
    %c0_5 = arith.constant 0 : index
    %3 = vector.load %arg2[%c16, %c0_5] : memref<88x32xf32, #tpu.memory_space<vmem>>, vector<1x32xf32>
    %c24 = arith.constant 24 : index
    %c0_6 = arith.constant 0 : index
    %4 = vector.load %arg2[%c24, %c0_6] : memref<88x32xf32, #tpu.memory_space<vmem>>, vector<1x32xf32>
    %c32 = arith.constant 32 : index
    %c0_7 = arith.constant 0 : index
    %5 = vector.load %arg2[%c32, %c0_7] : memref<88x32xf32, #tpu.memory_space<vmem>>, vector<32x32xf32>
    %c64 = arith.constant 64 : index
    %c0_8 = arith.constant 0 : index
    %6 = vector.load %arg2[%c64, %c0_8] : memref<88x32xf32, #tpu.memory_space<vmem>>, vector<1x32xf32>
    %c72 = arith.constant 72 : index
    %c0_9 = arith.constant 0 : index
    %7 = vector.load %arg2[%c72, %c0_9] : memref<88x32xf32, #tpu.memory_space<vmem>>, vector<1x32xf32>
    %c80 = arith.constant 80 : index
    %c0_10 = arith.constant 0 : index
    %8 = vector.load %arg2[%c80, %c0_10] : memref<88x32xf32, #tpu.memory_space<vmem>>, vector<1x1xf32>
    %cst = arith.constant dense<0.000000e+00> : vector<8x32xf32>
    %9 = tpu.matmul %0, %2, %cst {dimension_numbers = #tpu.dot_dimension_numbers<[1], [0], [0], [1], [0, 0, 1, 1], [], []>} : vector<8x16xf32>, vector<16x32xf32>, vector<8x32xf32> -> vector<8x32xf32>
    %10 = vector.broadcast %1 : vector<8x1xf32> to vector<8x32xf32>
    %11 = vector.broadcast %3 : vector<1x32xf32> to vector<8x32xf32>
    %12 = arith.mulf %10, %11 : vector<8x32xf32>
    %13 = arith.addf %9, %12 : vector<8x32xf32>
    %14 = vector.broadcast %4 : vector<1x32xf32> to vector<8x32xf32>
    %15 = arith.addf %13, %14 : vector<8x32xf32>
    %cst_11 = arith.constant 0.000000e+00 : f32
    %16 = vector.broadcast %cst_11 : f32 to vector<8x32xf32>
    %17 = arith.maximumf %15, %16 : vector<8x32xf32>
    %cst_12 = arith.constant dense<0.000000e+00> : vector<8x32xf32>
    %18 = tpu.matmul %17, %5, %cst_12 {dimension_numbers = #tpu.dot_dimension_numbers<[1], [0], [0], [1], [0, 0, 1, 1], [], []>} : vector<8x32xf32>, vector<32x32xf32>, vector<8x32xf32> -> vector<8x32xf32>
    %19 = vector.broadcast %6 : vector<1x32xf32> to vector<8x32xf32>
    %20 = arith.addf %18, %19 : vector<8x32xf32>
    %cst_13 = arith.constant 0.000000e+00 : f32
    %21 = vector.broadcast %cst_13 : f32 to vector<8x32xf32>
    %22 = arith.maximumf %20, %21 : vector<8x32xf32>
    %cst_14 = arith.constant dense<0.000000e+00> : vector<1x8xf32>
    %23 = tpu.matmul %7, %22, %cst_14 {dimension_numbers = #tpu.dot_dimension_numbers<[1], [1], [0], [0], [0, 0, 1, 0], [], []>} : vector<1x32xf32>, vector<8x32xf32>, vector<1x8xf32> -> vector<1x8xf32>
    %24 = vector.broadcast %8 : vector<1x1xf32> to vector<1x8xf32>
    %25 = arith.addf %23, %24 : vector<1x8xf32>
    %c0_15 = arith.constant 0 : index
    %c0_16 = arith.constant 0 : index
    %26 = vector.load %arg3[%c0_15, %c0_16] : memref<1x8xf32, #tpu.memory_space<vmem>>, vector<1x8xf32>
    tpu.vector_store %arg3[%c0_15, %c0_16], %25 {strides = array<i32>} : memref<1x8xf32, #tpu.memory_space<vmem>>, vector<1x8xf32>,
    return
  }
}

</mosaic_0001>

<bundles_post_ra>
// kernel: tpu_custom_call.1
= control target key start
LH: loop header
LB: loop body
LE: loop exit
PB: predicated region body
PF: predicated region fallthrough
CT: control target
= control target key end

     0   :  { %v361_v1 = vmov 0.0   ;;  %vm362_vm0 = vmmov 0   ;;  %vm38_vm1 = vcmask 130048   ;;  %v363_v5 = vmov 0   ;;  %s430_s0 = inlined_call_operand.vmem [shape: f32[8,16], index: 0, kind: input, shape index: {}]   ;;  %s431_s1 = inlined_call_operand.vmem [shape: f32[8,1], index: 1, kind: input, shape index: {}]   ;;  %s432_s2 = inlined_call_operand.vmem [shape: f32[88,32], index: 2, kind: input, shape index: {}]   ;;  %s433_s3 = inlined_call_operand.hbm [shape: f32[1,8], index: 3, kind: output, shape index: {}]  }
   0x1   :  { %v18_v0 = vld [vmem:[%s432_s2 + $0x8] sm:$0xff]  ;;  %311 = vmatprep.subr.mxu0 %v361_v1  ;;  %v17_v2 = vld [vmem:[%s432_s2] sm:$0xff]  ;;  %315 = vmatprep.mubr.msk.f32.mxu0 %vm362_vm0, %v361_v1 }
   0x2   :  { %v16_v3 = vld [vmem:[%s431_s1] sm:$0xff]  ;;  %312 = vmatpush3.msra.mxu0 %v18_v0  ;;  %338 = vset.pattern.permute.xlu0 %v363_v5 }
   0x3   :  { %v15_v4 = vld [vmem:[%s430_s0] sm:$0xff] }
   0x4   :  { %8 = vsyncpa [#allocation3], 0  ;;  %313 = vmatprep.subr.mxu0 %v361_v1  ;;  %30 = vperm.xlu0 %338, %v16_v3   ;;  %v27_v6 = vld [vmem:[%s432_s2 + $0x50] sm:$0x1]  ;;  %v24_v7 = vld [vmem:[%s432_s2 + $0x38] sm:$0xff]  ;;  %vm122_vm2 = vcmask 261120  }
   0x5   :  { %314 = vmatpush3.msra.mxu0 %v17_v2  ;;  %318 = vmatprep.subr.mxu1 %v361_v1  ;;  %v23_v8 = vld [vmem:[%s432_s2 + $0x30] sm:$0xff]  ;;  %v22_v9 = vld [vmem:[%s432_s2 + $0x28] sm:$0xff]  ;;  %v21_v10 = vld [vmem:[%s432_s2 + $0x20] sm:$0xff]  ;;  %s364_s9 = smov [#allocation2]   ;;  %vm278_vm3 = vcmask 57344  }
   0x6   :  { %316 = vmatmul.mubr.msk.f32.vlgmr.msra.gmra.mxu0 %vm38_vm1, %v15_v4  ;;  %326 = vmatprep.mubr.msk.f32.mxu1 %vm362_vm0, %v361_v1  ;;  %v294_v11 = vld [vmem:[%s432_s2 + $0x10] ss:$0 sm:$0xff]  ;;  %v296_v14 = vld [vmem:[%s432_s2 + $0x18] ss:$0 sm:$0xff]  ;;  %v297_v20 = vld [vmem:[%s432_s2 + $0x40] ss:$0 sm:$0xff] }
   0x7   :  { %329 = vmatprep.subr.mxu0 %v361_v1  ;;  %331 = vmatprep.mubr.msk.f32.mxu0 %vm362_vm0, %v361_v1  ;;  %v26_v25 = vld [vmem:[%s432_s2 + $0x48] sm:$0x1]  ;;  %s286_s10 = sshll.u32 %s364_s9, 4  ;;  %s287_s10 = int_to_ptr.vmem [resolvable:$true] %s286_s10 }
   0x8   :  { %199 = vperm.xlu0 %338, %v27_v6   ;;  %319 = vmatpush3.msra.mxu1 %v24_v7  ;;  %s339_s11 = scalar_lea.vmem %s287_s10, 16  ;;  %s343_s12 = scalar_lea.vmem %s287_s10, 32 }
   0x9   :  { %320 = vmatprep.subr.mxu1 %v361_v1  ;;  %p340_p0 = scmp.ne.s32.totalorder %s287_s10, %s339_s11  ;;  %p344_p1 = scmp.lt.s32.totalorder %s287_s10, %s287_s10 }
   0xa   :  { %321 = vmatpush3.msra.mxu1 %v23_v8  ;;  %p345_p2 = scmp.lt.s32.totalorder %s343_s12, %s339_s11 }
   0xb   :  { %322 = vmatprep.subr.mxu1 %v361_v1 }
   0xc   :  { %323 = vmatpush3.msra.mxu1 %v22_v9  ;;  %p346_p3 = por %p345_p2, %p344_p1 }
   0xd   :  { %324 = vmatprep.subr.mxu1 %v361_v1 }
   0xe   :  { %325 = vmatpush3.msra.mxu1 %v21_v10  ;;  %p347_p4 = pnand %p346_p3, %p340_p0 }
  0x7f   :  { %v31_v12 = vpop.permute.xlu0 %30 }
  0x80   :  { %v37_v13 = vmul.f32 %v294_v11, %v31_v12 }
  0x83   :  { %v200_v26 = vpop.permute.xlu0 %199 }
  0xc6   :  { %v108_v15 = vpop.f32.mrf.mxu0 }
  0xc7   :  { %v109_v16 = vadd.f32 %v108_v15, %v37_v13 }
  0xc8   :  { %v317_v17 = vpop.f32.mrf.mxu0 }
  0xc9   :  { %v116_v18 = vadd.f32 %v296_v14, %v109_v16 }
  0xcb   :  { %v117_v19 = vmax.f32 %v116_v18, 0.0 }
  0xcd   :  { %327 = vmatmul.mubr.msk.f32.vlgmr.msra.gmra.mxu1 %vm122_vm2, %v117_v19 }
 0x18d   :  { %v192_v21 = vpop.f32.mrf.mxu1 }
 0x18e   :  { %v193_v22 = vadd.f32 %v297_v20, %v192_v21 }
 0x18f   :  { %v328_v23 = vpop.f32.mrf.mxu1 }
 0x190   :  { %v196_v24 = vmax.f32 %v193_v22, 0.0 }
 0x192   :  { %330 = vmatpush3.xpose.msk.msra.mxu0 %vm122_vm2, %v196_v24 }
 0x195   :  { %332 = vmatmul.mubr.msk.f32.vlgmr.msra.gmra.mxu0 %vm122_vm2, %v26_v25 }
 0x255   :  { %v274_v27 = vpop.f32.mrf.mxu0 }
 0x256   :  { %v275_v28 = vadd.f32 %v274_v27, %v200_v26 }
 0x257   :  { %v333_v29 = vpop.f32.mrf.mxu0 }
 0x258   :  { %279 = vst.msk [vmem:[#allocation2] sm:$0x1] %vm278_vm3, %v275_v28 }
 0x259   :  { %350 = shalt.err (!%p347_p4)
}
 0x25a   :  { %289 = dma.vmem_to_hbm [thread:$0]  %s287_s10, 16, %s433_s3, [#allocation3]  }
 0x25b   :  { %359 = dma.done.wait [#allocation3], 16  }
 0x25c   :  { %360 = vsyncadd [#allocation3], 4294967280 }
 0x25d   :  { %293 = vsyncpa [#allocation3], 1 }

</bundles_post_ra>
